<compile_context>
chip_gen: v6e
topology: v6e:2x2x1
jax: 0.10.0
libtpu: 0.0.40
codegen_flags: <defaults>
</compile_context>

<pallas_src>
import math
import functools

import jax
import jax.numpy as jnp
from jax.experimental import pallas as pl
from jax.experimental.pallas import tpu as pltpu


def _build_pos_embedding(d_model: int, maxlen: int) -> jnp.ndarray:
    """Replicates PositionalEncoding.__init__ buffer construction."""
    den = jnp.exp(
        -jnp.arange(0, d_model, 2, dtype=jnp.float32) * math.log(10000.0) / d_model
    )
    pos = jnp.arange(0, maxlen, dtype=jnp.float32)[:, None]
    pe = jnp.zeros((maxlen, d_model), dtype=jnp.float32)
    pe = pe.at[:, 0::2].set(jnp.sin(pos * den))
    pe = pe.at[:, 1::2].set(jnp.cos(pos * den))
    return pe


def _pe_kernel(seed_ref, x_ref, pe_ref, o_ref, *, p: float):
    # x_ref / o_ref: (TB, TL) block; pe_ref: (1, TL) block (broadcast over batch rows)
    y = x_ref[...] + pe_ref[...]

    if p > 0.0:
        # Unique PRNG stream per grid step (flattened 2-D grid index).
        pltpu.prng_seed(
            seed_ref[0]
            + pl.program_id(0) * pl.num_programs(1)
            + pl.program_id(1)
        )
        bits = pltpu.prng_random_bits(y.shape)
        if bits.dtype != jnp.uint32:
            bits = pltpu.bitcast(bits, jnp.uint32)
        # Drop with probability p using a single integer compare per element.
        threshold = jnp.uint32(min(int(round(p * 2.0 ** 32)), (1 << 32) - 1))
        keep = bits >= threshold
        y = jnp.where(keep, y * (1.0 / (1.0 - p)), jnp.zeros_like(y))

    o_ref[...] = y.astype(o_ref.dtype)


# ~1 MiB per block: large enough to sit near the HBM roofline, small enough
# that 2x(in) + 2x(out) + 2x(pe) double-buffers stay far under v7x's VMEM.
_TARGET_TILE_BYTES = 1 << 20


def _choose_tiles(B: int, L: int, itemsize: int):
    # Sublane (batch) tile: full batch if small, else a multiple of 8.
    TB = B if B <= 8 else 8
    # Lane tile: multiple of 128 sized so one block is ~_TARGET_TILE_BYTES.
    budget = max(128, _TARGET_TILE_BYTES // (itemsize * TB))
    if L <= budget:
        TL = L                      # single full-extent chunk (always legal)
    else:
        TL = (budget // 128) * 128  # lane-dense multiple of 128
    return TB, TL


def positional_encoding(x: jnp.ndarray,
                        pos_embedding: jnp.ndarray,
                        *,
                        dropout_p: float = 0.0,
                        seed: int = 0) -> jnp.ndarray:
    """x: (B, S, D). pos_embedding: (maxlen, D). Returns (B, S, D)."""
    B, S, D = x.shape
    L = S * D

    # The op is purely elementwise, so flatten (S, D) into one wide, lane-dense
    # axis; the positional table repeats per batch row.
    x2 = x.reshape(B, L)
    pe2 = pos_embedding[:S].astype(x.dtype).reshape(1, L)

    TB, TL = _choose_tiles(B, L, x2.dtype.itemsize)
    grid = (pl.cdiv(B, TB), pl.cdiv(L, TL))

    seed_arr = jnp.array([seed], dtype=jnp.int32)
    kernel = functools.partial(_pe_kernel, p=float(dropout_p))

    out2 = pl.pallas_call(
        kernel,
        out_shape=jax.ShapeDtypeStruct((B, L), x.dtype),
        grid_spec=pltpu.PrefetchScalarGridSpec(
            num_scalar_prefetch=1,            # dropout seed lands in SMEM
            grid=grid,
            in_specs=[
                pl.BlockSpec((TB, TL), lambda b, l, seed: (b, l)),  # x
                pl.BlockSpec((1, TL), lambda b, l, seed: (0, l)),   # pos table
            ],
            out_specs=pl.BlockSpec((TB, TL), lambda b, l, seed: (b, l)),
        ),
        compiler_params=pltpu.CompilerParams(
            dimension_semantics=("parallel", "parallel"),
            vmem_limit_bytes=32 * 1024 * 1024,
        ),
    )(seed_arr, x2, pe2)

    return out2.reshape(B, S, D)


if __name__ == "__main__":
    d_model = 32
    maxlen = 64
    B, S = 2, 8

    key = jax.random.PRNGKey(0)
    x = jax.random.normal(key, (B, S, d_model), dtype=jnp.float32)

    pos_embedding = _build_pos_embedding(d_model, maxlen)

    # Eval-mode (dropout is identity): must match the pure-JAX reference exactly.
    out = positional_encoding(x, pos_embedding, dropout_p=0.0)
    out = jax.block_until_ready(out)

    ref = x + pos_embedding[:S][None, :, :]
    assert out.shape == (B, S, d_model)
    assert jnp.allclose(out, ref, atol=1e-6), "mismatch vs reference add"

    # Training-mode dropout uses the TPU hardware PRNG (pltpu.prng_seed /
    # prng_random_bits), which has no CPU lowering — only exercise it when the
    # backend really is a TPU.
    if jax.devices()[0].platform == "tpu":
        p = 0.5
        out_drop = positional_encoding(x, pos_embedding, dropout_p=p, seed=123)
        out_drop = jax.block_until_ready(out_drop)
        assert out_drop.shape == (B, S, d_model)
        # Kept elements must equal ref / (1 - p); dropped elements are exactly 0.
        scaled_ref = ref * (1.0 / (1.0 - p))
        kept = out_drop != 0
        assert jnp.allclose(
            jnp.where(kept, out_drop, scaled_ref), scaled_ref, atol=1e-5
        ), "dropout-kept values not scaled correctly"

    print("KERNEL_OK")
</pallas_src>

<mosaic_0001>
module attributes {stable_mosaic.version = 11 : i64} {
  func.func @_pe_kernel(%arg0: i32, %arg1: i32, %arg2: memref<1xi32, #tpu.memory_space<smem>>, %arg3: memref<2x256xf32, #tpu.memory_space<vmem>>, %arg4: memref<1x256xf32, #tpu.memory_space<vmem>>, %arg5: memref<2x256xf32, #tpu.memory_space<vmem>>) attributes {dimension_semantics = [#tpu.dimension_semantics<parallel>, #tpu.dimension_semantics<parallel>], iteration_bounds = array<i64: 1, 1>, scalar_prefetch = 1 : i64, scratch_operands = 0 : i64, tpu.core_type = #tpu.core_type<tc>, window_params = [{transform_indices = @transform_0, window_bounds = array<i64: 2, 256>}, {transform_indices = @transform_1, window_bounds = array<i64: 1, 256>}, {transform_indices = @transform_2, window_bounds = array<i64: 2, 256>}]} {
    %c0 = arith.constant 0 : index
    %c0_0 = arith.constant 0 : index
    %0 = vector.load %arg3[%c0, %c0_0] : memref<2x256xf32, #tpu.memory_space<vmem>>, vector<2x256xf32>
    %c0_1 = arith.constant 0 : index
    %c0_2 = arith.constant 0 : index
    %1 = vector.load %arg4[%c0_1, %c0_2] : memref<1x256xf32, #tpu.memory_space<vmem>>, vector<1x256xf32>
    %2 = vector.broadcast %1 : vector<1x256xf32> to vector<2x256xf32>
    %3 = arith.addf %0, %2 : vector<2x256xf32>
    %c0_3 = arith.constant 0 : index
    %c0_4 = arith.constant 0 : index
    %4 = vector.load %arg5[%c0_3, %c0_4] : memref<2x256xf32, #tpu.memory_space<vmem>>, vector<2x256xf32>
    tpu.vector_store %arg5[%c0_3, %c0_4], %3 {strides = array<i32>} : memref<2x256xf32, #tpu.memory_space<vmem>>, vector<2x256xf32>,
    return
  }
  func.func @transform_0(%arg0: i32, %arg1: i32, %arg2: memref<1xi32, #tpu.memory_space<smem>>) -> (i32, i32) {
    %c0_i32 = arith.constant 0 : i32
    return %arg0, %arg1 : i32, i32
  }
  func.func @transform_1(%arg0: i32, %arg1: i32, %arg2: memref<1xi32, #tpu.memory_space<smem>>) -> (i32, i32) {
    %c0_i32 = arith.constant 0 : i32
    %c0_i32_0 = arith.constant 0 : i32
    return %c0_i32, %arg1 : i32, i32
  }
  func.func @transform_2(%arg0: i32, %arg1: i32, %arg2: memref<1xi32, #tpu.memory_space<smem>>) -> (i32, i32) {
    %c0_i32 = arith.constant 0 : i32
    return %arg0, %arg1 : i32, i32
  }
}

</mosaic_0001>

<bundles_post_ra>
// kernel: tpu_custom_call.1
= control target key start
LH: loop header
LB: loop body
LE: loop exit
PB: predicated region body
PF: predicated region fallthrough
CT: control target
= control target key end

     0   :  { %9 = vsyncpa [#allocation5], 0  ;;  %s142_s0 = inlined_call_operand.<no memory space> [shape: s32[1], index: 0, kind: input, shape index: {}]   ;;  %s143_s1 = inlined_call_operand.hbm [shape: f32[2,256], index: 1, kind: input, shape index: {}]   ;;  %s144_s2 = inlined_call_operand.vmem [shape: f32[1,256], index: 2, kind: input, shape index: {}]   ;;  %s145_s3 = inlined_call_operand.hbm [shape: f32[2,256], index: 3, kind: output, shape index: {}]  }
   0x1   :  { %10 = vsyncpa [#allocation6], 0  ;;  %s110_s12 = smov [#allocation4]  }
   0x2   :  { %s17_s13 = sshll.u32 %s110_s12, 4  ;;  %s18_s13 = int_to_ptr.vmem [resolvable:$true] %s17_s13 }
   0x3   :  { %s74_s14 = scalar_lea.vmem %s18_s13, 64  ;;  %p79_p1 = scmp.lt.s32.totalorder %s18_s13, %s18_s13 }
   0x4   :  { %p75_p0 = scmp.ne.s32.totalorder %s18_s13, %s74_s14  ;;  %p80_p2 = scmp.lt.s32.totalorder %s74_s14, %s74_s14 }
   0x6   :  { %p81_p3 = por %p80_p2, %p79_p1 }
   0x8   :  { %p82_p4 = pnand %p81_p3, %p75_p0 }
   0xa   :  { %85 = shalt.err (!%p82_p4)
}
   0xb   :  { %20 = dma.hbm_to_vmem [thread:$0]  %s143_s1, 64, %s18_s13, [#allocation5]  }
   0xc   :  { %106 = dma.done.wait [#allocation5], 64  }
   0xd   :  { %107 = vsyncadd [#allocation5], 4294967232  ;;  %v29_v0 = vlaneseq  ;;  %v111_v1 = vmov 1983009808   ;;  %v27_v7 = vld [vmem:[%s144_s2] sm:$0x3] }
   0xe   :  { %v39_v2 = vunpack.c.l.s4 %v111_v1  ;;  %v26_v12 = vld [vmem:[#allocation4] sm:$0xf]  ;;  %s112_s18 = smov [#allocation7]  }
   0xf   :  { %v30_v3 = vshrl.u32 %v29_v0, 7  ;;  %s54_s1 = sshll.u32 %s112_s18, 4  ;;  %s55_s1 = int_to_ptr.vmem [resolvable:$true] %s54_s1 }
  0x10   :  { %v40_v6 = vunpack.c.0.s8 %v39_v2  ;;  %s86_s19 = scalar_lea.vmem %s55_s1, 64  ;;  %p91_p6 = scmp.lt.s32.totalorder %s55_s1, %s55_s1 }
  0x11   :  { %v31_v4 = vsub.s32 0, %v30_v3  ;;  %v35_v5 = vsub.s32 1, %v30_v3  ;;  %p87_p5 = scmp.ne.s32.totalorder %s55_s1, %s86_s19  ;;  %p92_p7 = scmp.lt.s32.totalorder %s86_s19, %s86_s19 }
  0x12   :  { %v43_v10 = vsub.s32 %v40_v6, %v30_v3 }
  0x13   :  { %v32_v8 = vrot.slane %v27_v7, %v31_v4  ;;  %v36_v9 = vrot.slane %v27_v7, %v35_v5  ;;  %p93_p8 = por %p92_p7, %p91_p6 }
  0x15   :  { %v37_v11 = vcombine.low %v32_v8, %v36_v9  ;;  %p94_p9 = pnand %p93_p8, %p87_p5 }
  0x17   :  { %v44_v13 = vrot.slane %v37_v11, %v43_v10 }
  0x19   :  { %v46_v14 = vadd.f32 %v44_v13, %v26_v12 }
  0x1b   :  { %47 = vst [vmem:[#allocation7] sm:$0xf] %v46_v14 }
  0x1c   :  { %97 = shalt.err (!%p94_p9)
}
  0x1d   :  { %57 = dma.vmem_to_hbm [thread:$0]  %s55_s1, 64, %s145_s3, [#allocation6]  }
  0x1e   :  { %108 = dma.done.wait [#allocation6], 64  }
  0x1f   :  { %109 = vsyncadd [#allocation6], 4294967232 }
  0x20   :  { %61 = vsyncpa [#allocation5], 1 }
  0x21   :  { %62 = vsyncpa [#allocation6], 1 }

</bundles_post_ra>
